<compile_context>
chip_gen: v7x
topology: tpu7x:2x2x1
jax: 0.10.0
libtpu: 0.0.40
codegen_flags: <defaults>
</compile_context>

<pallas_src>
import jax
import jax.numpy as jnp
from jax import lax
from jax.experimental import pallas as pl
from jax.experimental.pallas import tpu as pltpu


def _round_up(x, m):
    return ((x + m - 1) // m) * m


def _make_single_k_kernel(compute_dtype):
    """o = (x @ W + b), whole K in one dot. No accumulator scratch."""

    def kernel(x_ref, w_ref, b_ref, o_ref):
        # x_ref: (tm, K) native dtype, w_ref: (K, tn) compute_dtype, b_ref: (1, tn) f32
        x = x_ref[...].astype(compute_dtype)          # cast fused in-kernel
        acc = jnp.dot(x, w_ref[...], preferred_element_type=jnp.float32)
        o_ref[...] = (acc + b_ref[...]).astype(o_ref.dtype)

    return kernel


def _make_multi_k_kernel(compute_dtype, tk, valid_k, nk):
    """K-tiled path: f32 acc initialised with bias at k==0 (no zero-fill),
    in-kernel masking of the ragged K tail (x is NOT padded in the wrapper)."""
    needs_mask = (valid_k % tk) != 0

    def kernel(x_ref, w_ref, b_ref, o_ref, acc_ref):
        k = pl.program_id(2)
        x = x_ref[...]
        if needs_mask:
            col = lax.broadcasted_iota(jnp.int32, x.shape, 1) + k * tk
            x = jnp.where(col < valid_k, x, jnp.zeros_like(x))
        part = jnp.dot(x.astype(compute_dtype), w_ref[...],
                       preferred_element_type=jnp.float32)

        @pl.when(k == 0)
        def _():
            acc_ref[...] = part + b_ref[...]          # bias folded into acc init

        @pl.when(k != 0)
        def _():
            acc_ref[...] = acc_ref[...] + part

        @pl.when(k == nk - 1)
        def _():
            o_ref[...] = acc_ref[...].astype(o_ref.dtype)

    return kernel


def make_fc_embedding(weight, bias, *, compute_dtype=jnp.bfloat16, out_dtype=None,
                      tm=512, tn=512, tk=512,
                      resident_weight_bytes=8 * 1024 * 1024,
                      vmem_limit_bytes=48 * 1024 * 1024):
    """One-time parameter prep (transpose + pad + cast); returns forward(x)."""
    weight = jnp.asarray(weight)
    bias = jnp.asarray(bias)
    out_ch, in_ch = weight.shape
    assert bias.shape == (out_ch,)
    if compute_dtype is None:
        compute_dtype = weight.dtype
    cd_bytes = jnp.dtype(compute_dtype).itemsize

    n128 = _round_up(out_ch, 128)

    # --- static path selection ---------------------------------------------
    # Resident path: bf16 weight small enough to live in VMEM for the whole
    # grid (constant index map -> DMA'd exactly once), K not tiled.
    resident = (in_ch * n128 * cd_bytes <= resident_weight_bytes
                and in_ch <= 1024 and n128 <= 2048)
    multi_k = (not resident) and in_ch > tk

    if resident:
        tn_eff = n_pad = n128
        tk_eff = k_pad = in_ch          # block dim == full array dim (legal, no pad)
        grid_k = 1
    else:
        tn_eff = min(tn, n128)
        n_pad = _round_up(out_ch, tn_eff)   # tn divides n_pad: W blocks never OOB
        if multi_k:
            tk_eff = tk
            k_pad = _round_up(in_ch, tk_eff)
            grid_k = k_pad // tk_eff
        else:
            tk_eff = k_pad = in_ch
            grid_k = 1
    grid_n = n_pad // tn_eff

    # --- init-time parameter prep (once, not per forward call) --------------
    w_t = weight.T                                      # (in_ch, out_ch) == (K, N)
    if (k_pad, n_pad) != (in_ch, out_ch):
        w_t = jnp.pad(w_t, ((0, k_pad - in_ch), (0, n_pad - out_ch)))
    w_t = jax.block_until_ready(w_t.astype(compute_dtype))
    b_p = jax.block_until_ready(
        jnp.pad(bias.astype(jnp.float32), (0, n_pad - out_ch)).reshape(1, n_pad))

    single_k_kernel = _make_single_k_kernel(compute_dtype)
    multi_k_kernel = (_make_multi_k_kernel(compute_dtype, tk_eff, in_ch, grid_k)
                      if multi_k else None)

    def forward(x):
        b, n, c, l = x.shape
        assert c * l == in_ch, (c * l, in_ch)
        m = b * n
        od = x.dtype if out_dtype is None else out_dtype

        # Metadata-only reshape: no cast, no pad pass over HBM.
        x2d = x.reshape(m, in_ch)

        # M tiling: multiple of 16 (bf16 sublane packing). Split M when the
        # grid would otherwise have a single parallel step (v7x: 2 TCs).
        tm_eff = min(tm, _round_up(m, 16))
        grid_m = pl.cdiv(m, tm_eff)
        if grid_m * grid_n == 1 and m > 16:
            tm_eff = _round_up(-(-m // 2), 16)
            grid_m = pl.cdiv(m, tm_eff)

        out_shape = jax.ShapeDtypeStruct((m, out_ch), od)   # unpadded output

        if resident:
            out2d = pl.pallas_call(
                single_k_kernel,
                out_shape=out_shape,
                grid_spec=pltpu.PrefetchScalarGridSpec(
                    num_scalar_prefetch=0,
                    grid=(grid_m,),
                    in_specs=[
                        pl.BlockSpec((tm_eff, in_ch), lambda i: (i, 0)),   # x (native dtype)
                        pl.BlockSpec((in_ch, n_pad), lambda i: (0, 0)),    # W resident, DMA'd once
                        pl.BlockSpec((1, n_pad), lambda i: (0, 0)),        # bias resident
                    ],
                    out_specs=pl.BlockSpec((tm_eff, n_pad), lambda i: (i, 0)),
                ),
                compiler_params=pltpu.CompilerParams(
                    dimension_semantics=("parallel",),
                    vmem_limit_bytes=vmem_limit_bytes),
            )(x2d, w_t, b_p)
        elif not multi_k:
            # Streaming weight, whole K in one dot; x tile DMA'd once per m-tile
            # (its index map is constant across the inner j axis).
            out2d = pl.pallas_call(
                single_k_kernel,
                out_shape=out_shape,
                grid_spec=pltpu.PrefetchScalarGridSpec(
                    num_scalar_prefetch=0,
                    grid=(grid_m, grid_n),
                    in_specs=[
                        pl.BlockSpec((tm_eff, in_ch), lambda i, j: (i, 0)),
                        pl.BlockSpec((in_ch, tn_eff), lambda i, j: (0, j)),
                        pl.BlockSpec((1, tn_eff), lambda i, j: (0, j)),
                    ],
                    out_specs=pl.BlockSpec((tm_eff, tn_eff), lambda i, j: (i, j)),
                ),
                compiler_params=pltpu.CompilerParams(
                    dimension_semantics=("parallel", "parallel"),
                    vmem_limit_bytes=vmem_limit_bytes),
            )(x2d, w_t, b_p)
        else:
            out2d = pl.pallas_call(
                multi_k_kernel,
                out_shape=out_shape,
                grid_spec=pltpu.PrefetchScalarGridSpec(
                    num_scalar_prefetch=0,
                    grid=(grid_m, grid_n, grid_k),
                    in_specs=[
                        pl.BlockSpec((tm_eff, tk_eff), lambda i, j, k: (i, k)),
                        pl.BlockSpec((tk_eff, tn_eff), lambda i, j, k: (k, j)),
                        pl.BlockSpec((1, tn_eff), lambda i, j, k: (0, j)),
                    ],
                    out_specs=pl.BlockSpec((tm_eff, tn_eff), lambda i, j, k: (i, j)),
                    scratch_shapes=[pltpu.VMEM((tm_eff, tn_eff), jnp.float32)],
                ),
                compiler_params=pltpu.CompilerParams(
                    dimension_semantics=("parallel", "parallel", "arbitrary"),
                    vmem_limit_bytes=vmem_limit_bytes),
            )(x2d, w_t, b_p)

        return out2d.reshape(b, n, out_ch)

    return jax.jit(forward)


def _check(x, weight, bias, out):
    in_ch = weight.shape[1]
    x2d = x.reshape(x.shape[0], x.shape[1], in_ch)
    # Reference at the kernel's operand precision (bf16 operands, f32 acc).
    ref_bf16 = jnp.einsum(
        "bnk,ok->bno",
        x2d.astype(jnp.bfloat16).astype(jnp.float32),
        weight.astype(jnp.bfloat16).astype(jnp.float32),
        precision=lax.Precision.HIGHEST) + bias
    assert jnp.allclose(out.astype(jnp.float32), ref_bf16, atol=1e-3, rtol=1e-3)
    # Full-f32 reference: loose sanity check (bf16 operand rounding only).
    ref_f32 = jnp.einsum("bnk,ok->bno", x2d, weight,
                         precision=lax.Precision.HIGHEST) + bias
    assert jnp.allclose(out.astype(jnp.float32), ref_f32, atol=5e-2, rtol=5e-2)


if __name__ == "__main__":
    key = jax.random.PRNGKey(0)

    # Case 1: shapes consistent with the module: x (b, n, c, l), in_ch = c*l.
    b, n, c, l = 2, 64, 4, 32          # -> in_ch = 128
    in_ch, out_ch = c * l, 128
    kx, kw, kb, key = jax.random.split(key, 4)
    x = jax.random.normal(kx, (b, n, c, l), dtype=jnp.float32)
    bound = 1.0 / (in_ch ** 0.5)
    weight = jax.random.uniform(kw, (out_ch, in_ch), jnp.float32, -bound, bound)
    bias = jax.random.uniform(kb, (out_ch,), jnp.float32, -bound, bound)

    fc_forward = make_fc_embedding(weight, bias)
    out = jax.block_until_ready(fc_forward(x))
    assert out.shape == (b, n, out_ch)
    _check(x, weight, bias, out)

    # Case 2: out_ch not a multiple of 128 -> exercises the unpadded output
    # (masked store of the ragged N tail), still the resident fast path.
    out_ch2 = 200
    kx, kw, kb, key = jax.random.split(key, 4)
    x2 = jax.random.normal(kx, (b, n, c, l), dtype=jnp.float32)
    weight2 = jax.random.uniform(kw, (out_ch2, in_ch), jnp.float32, -bound, bound)
    bias2 = jax.random.uniform(kb, (out_ch2,), jnp.float32, -bound, bound)
    out2 = jax.block_until_ready(make_fc_embedding(weight2, bias2)(x2))
    assert out2.shape == (b, n, out_ch2)
    _check(x2, weight2, bias2, out2)

    print("KERNEL_OK")
</pallas_src>

<mosaic_0001>
module attributes {stable_mosaic.version = 11 : i64} {
  func.func @kernel(%arg0: i32, %arg1: memref<64x128xf32, #tpu.memory_space<vmem>>, %arg2: memref<128x128xbf16, #tpu.memory_space<vmem>>, %arg3: memref<1x128xf32, #tpu.memory_space<vmem>>, %arg4: memref<64x128xf32, #tpu.memory_space<vmem>>) attributes {dimension_semantics = [#tpu.dimension_semantics<parallel>], iteration_bounds = array<i64: 2>, scalar_prefetch = 0 : i64, scratch_operands = 0 : i64, tpu.core_type = #tpu.core_type<tc>, window_params = [{transform_indices = @transform_0, window_bounds = array<i64: 64, 128>}, {pipeline_mode = #tpu.pipeline_mode<synchronous>, transform_indices = @transform_1, window_bounds = array<i64: 128, 128>}, {pipeline_mode = #tpu.pipeline_mode<synchronous>, transform_indices = @transform_2, window_bounds = array<i64: 1, 128>}, {transform_indices = @transform_3, window_bounds = array<i64: 64, 128>}]} {
    %c0 = arith.constant 0 : index
    %c0_0 = arith.constant 0 : index
    %0 = vector.load %arg1[%c0, %c0_0] : memref<64x128xf32, #tpu.memory_space<vmem>>, vector<64x128xf32>
    %1 = arith.truncf %0 : vector<64x128xf32> to vector<64x128xbf16>
    %c0_1 = arith.constant 0 : index
    %c0_2 = arith.constant 0 : index
    %2 = vector.load %arg2[%c0_1, %c0_2] : memref<128x128xbf16, #tpu.memory_space<vmem>>, vector<128x128xbf16>
    %cst = arith.constant dense<0.000000e+00> : vector<64x128xf32>
    %3 = tpu.matmul %1, %2, %cst {dimension_numbers = #tpu.dot_dimension_numbers<[1], [0], [0], [1], [0, 0, 1, 1], [], []>} : vector<64x128xbf16>, vector<128x128xbf16>, vector<64x128xf32> -> vector<64x128xf32>
    %c0_3 = arith.constant 0 : index
    %c0_4 = arith.constant 0 : index
    %4 = vector.load %arg3[%c0_3, %c0_4] : memref<1x128xf32, #tpu.memory_space<vmem>>, vector<1x128xf32>
    %5 = vector.broadcast %4 : vector<1x128xf32> to vector<64x128xf32>
    %6 = arith.addf %3, %5 : vector<64x128xf32>
    %c0_5 = arith.constant 0 : index
    %c0_6 = arith.constant 0 : index
    %7 = vector.load %arg4[%c0_5, %c0_6] : memref<64x128xf32, #tpu.memory_space<vmem>>, vector<64x128xf32>
    tpu.vector_store %arg4[%c0_5, %c0_6], %6 {strides = array<i32>} : memref<64x128xf32, #tpu.memory_space<vmem>>, vector<64x128xf32>,
    return
  }
  func.func @transform_0(%arg0: i32) -> (i32, i32) {
    %c0_i32 = arith.constant 0 : i32
    %c0_i32_0 = arith.constant 0 : i32
    return %arg0, %c0_i32 : i32, i32
  }
  func.func @transform_1(%arg0: i32) -> (i32, i32) {
    %c0_i32 = arith.constant 0 : i32
    %c0_i32_0 = arith.constant 0 : i32
    %c0_i32_1 = arith.constant 0 : i32
    return %c0_i32, %c0_i32_0 : i32, i32
  }
  func.func @transform_2(%arg0: i32) -> (i32, i32) {
    %c0_i32 = arith.constant 0 : i32
    %c0_i32_0 = arith.constant 0 : i32
    %c0_i32_1 = arith.constant 0 : i32
    return %c0_i32, %c0_i32_0 : i32, i32
  }
  func.func @transform_3(%arg0: i32) -> (i32, i32) {
    %c0_i32 = arith.constant 0 : i32
    %c0_i32_0 = arith.constant 0 : i32
    return %arg0, %c0_i32 : i32, i32
  }
}

</mosaic_0001>

<bundles_post_ra>
// kernel: forward.1
= control target key start
LH: loop header
LB: loop body
LE: loop exit
PB: predicated region body
PF: predicated region fallthrough
CT: control target
= control target key end

     0   :  { %8 = vsyncpa [#allocation3], 0  ;;  %s758_s0 = inlined_call_operand.vmem [shape: f32[128,128], index: 0, kind: input, shape index: {}]   ;;  %s759_s1 = inlined_call_operand.vmem [shape: bf16[128,128], index: 1, kind: input, shape index: {}]   ;;  %s760_s2 = inlined_call_operand.vmem [shape: f32[1,128], index: 2, kind: input, shape index: {}]   ;;  %s761_s3 = inlined_call_operand.hbm [shape: f32[128,128], index: 3, kind: output, shape index: {}]  }
   0x1   :  { %10 = vsyncpa [#allocation3 + $0x1], 0  ;;  %s615_s12 = smov 0   ;;  %s617_s13 = smov 0  }
   0x2   :  { %s619_s14 = smov 0   ;;  %s621_s15 = smov 0  }
   0x3 LB: > { %s636_s16 = sadd.s32 4294967295, %s590_s15   ;;  %s405_s17 = sadd.s32 4294967294, %s590_s15   ;;  %s590_s15 = sphi %s621_s15, %s767_s15   ;;  %s586_s14 = sphi %s619_s14, %s766_s14   ;;  %s582_s13 = sphi %s617_s13, %s765_s13   ;;  %s578_s12 = sphi %s615_s12, %s764_s12  }
   0x4   : > { %s640_s18 = sadd.s32 1, %s590_s15   ;;  %s91_s19 = sadd.s32 1, %s586_s14 }
   0x5   : > { %s88_s20 = ssub.s32 %s590_s15, %s640_s18  ;;  %p101_p0 = scmp.ne.s32.totalorder %s586_s14, %s582_s13 }
   0x6   : > { %p89_p1 = scmp.eq.s32.totalorder %s88_s20, 0  ;;  %p102_p2 = scmp.eq.s32.totalorder %s636_s16, 1 }
   0x7   : > { %p107_p3 = scmp.ne.s32.totalorder %s582_s13, %s578_s12  ;;  %p108_p4 = scmp.eq.s32.totalorder %s405_s17, 1 }
   0x8   : > { %s651_s21 = scalar_select %p89_p1, %s586_s14, %s91_s19  }
   0x9   : > { %p653_p5 = por %p102_p2, %p101_p0  ;;  %p657_p6 = por %p108_p4, %p107_p3 }
   0xa   : > { %p408_p7 = scmp.ge.s32.totalorder %s590_s15, 1  ;;  %p141_p8 = scmp.lt.s32.totalorder %s590_s15, 3 }
   0xc   : > { %p142_p9 = pnand %p408_p7, %p141_p8 }
   0xd   : > { %v520_v0 = vld [vmem:[%s759_s1] sm:$0xff] (!%p142_p9)   ;;  %s410_s26 = sshll.u32 (!%p142_p9), %s636_s16, 3  ;;  %v521_v1 = vld [vmem:[%s759_s1 + $0x8] sm:$0xff] (!%p142_p9)   ;;  %v522_v2 = vld [vmem:[%s759_s1 + $0x10] sm:$0xff] (!%p142_p9)   ;;  %s162_s27 = sand.u32 (!%p142_p9), 1, %s582_s13  }
   0xe   : > { %145 = sbr.rel (%p142_p9) target bundleno = 279 (0x117), region = 32  ;;  %p166_p10 = scmp.lt.s32.totalorder (!%p142_p9), %s410_s26, 15  ;;  %439 = vmatprep.subr.bf16.mxu0 (!%p142_p9), %v520_v0  ;;  %463 = vmatprep.subr.bf16.mxu1 (!%p142_p9), %v520_v0  ;;  %v523_v3 = vld [vmem:[%s759_s1 + $0x18] sm:$0xff] (!%p142_p9)   ;;  %v524_v10 = vld [vmem:[%s759_s1 + $0x20] sm:$0xff] (!%p142_p9)   ;;  %v525_v11 = vld [vmem:[%s759_s1 + $0x28] sm:$0xff] (!%p142_p9)  }
   0xf   : > { %440 = vmatpush3.bf16.msra.mxu0 (!%p142_p9), %v520_v0  ;;  %471 = vmatpush3.bf16.msra.mxu1 (!%p142_p9), %v520_v0  ;;  %v526_v12 = vld [vmem:[%s759_s1 + $0x30] sm:$0xff] (!%p142_p9)   ;;  %v527_v13 = vld [vmem:[%s759_s1 + $0x38] sm:$0xff] (!%p142_p9)   ;;  %s409_s28 = sshll.u32 (!%p142_p9), %s162_s27, 6  ;;  %v412_v20 = vld [vmem:[%s760_s2] ss:$0 sm:$0xff] (!%p142_p9)  ;;  %s717_s9 = scalar_lea.sflag (!%p142_p9), [#allocation3], %s162_s27 }
  0x10   : > { %441 = vmatprep.subr.bf16.mxu0 (!%p142_p9), %v521_v1  ;;  %464 = vmatprep.subr.bf16.mxu1 (!%p142_p9), %v521_v1  ;;  %s164_s5 = scalar_lea.vmem (!%p142_p9), [#allocation2], %s409_s28  ;;  %s592_s11 = smov (!%p142_p9), [#allocation2]  }
  0x11   : > { %s343_s6 = sshll.u32 (!%p142_p9), %s164_s5, 4  ;;  %s532_s17 = sshll.u32 (!%p142_p9), %s592_s11, 4  ;;  %s713_s6 = int_to_ptr.vmem [resolvable:$true] %s343_s6  ;;  %s533_s17 = int_to_ptr.vmem [resolvable:$false] %s532_s17 }
  0x12   : > { %s528_s10 = scalar_lea.vmem (!%p142_p9), %s713_s6, 1024  ;;  %s534_s19 = scalar_lea.vmem (!%p142_p9), %s533_s17, 2048 }
  0x13   : > { %442 = vmatpush3.bf16.msra.mxu0 (!%p142_p9), %v521_v1  ;;  %472 = vmatpush3.bf16.msra.mxu1 (!%p142_p9), %v521_v1  ;;  %p529_p11 = scmp.ne.s32.totalorder (!%p142_p9), %s713_s6, %s528_s10  ;;  %p535_p0 = scmp.lt.s32.totalorder (!%p142_p9), %s713_s6, %s533_s17 }
  0x14   : > { %443 = vmatprep.subr.bf16.mxu0 (!%p142_p9), %v522_v2  ;;  %465 = vmatprep.subr.bf16.mxu1 (!%p142_p9), %v522_v2  ;;  %p536_p1 = scmp.lt.s32.totalorder (!%p142_p9), %s534_s19, %s528_s10 }
  0x15   : > { %s769_s26 = smov (!%p166_p10, %s410_s26), 15  ;;  %p530_p12 = pnand %p529_p11, %p653_p5 }
  0x16   : > { %s411_s4 = sshll.u32 %s769_s26, 3  ;;  %p537_p2 = por %p536_p1, %p535_p0 }
  0x17   : > { %s676_s7 = scalar_lea.vmem %s758_s0, %s411_s4  ;;  %444 = vmatpush3.bf16.msra.mxu0 %v522_v2  ;;  %473 = vmatpush3.bf16.msra.mxu1 %v522_v2  ;;  %s426_s4 = sshll.u32 %s636_s16, 10 }
  0x18   : > { %v173_v4 = vld [vmem:[%s676_s7] sm:$0xff]  ;;  %v174_v5 = vld [vmem:[%s676_s7 + $0x8] sm:$0xff]  ;;  %445 = vmatprep.subr.bf16.mxu0 %v523_v3  ;;  %466 = vmatprep.subr.bf16.mxu1 %v523_v3  ;;  %v175_v14 = vld [vmem:[%s676_s7 + $0x10] sm:$0xff]  ;;  %s711_s8 = scalar_lea.hbm %s761_s3, %s426_s4  ;;  %p531_p13 = pneg %p530_p12 }
  0x19   : > { %v177_v6 = vld [vmem:[%s676_s7 + $0x20] sm:$0xff]  ;;  %v181_v7 = vpack.c.bf16 %v174_v5, %v173_v4  ;;  %v178_v8 = vld [vmem:[%s676_s7 + $0x28] sm:$0xff]  ;;  %v176_v15 = vld [vmem:[%s676_s7 + $0x18] sm:$0xff] }
  0x1a   : > { %v183_v9 = vpack.c.bf16 %v178_v8, %v177_v6  ;;  %v179_v16 = vld [vmem:[%s676_s7 + $0x30] sm:$0xff]  ;;  %v180_v17 = vld [vmem:[%s676_s7 + $0x38] sm:$0xff]  ;;  %v182_v18 = vpack.c.bf16 %v176_v15, %v175_v14  ;;  %p538_p3 = pnand %p537_p2, %p531_p13 }
  0x1b   : > { %455 = vmatprep.mubr.bf16.mxu0 %v181_v7  ;;  %446 = vmatpush3.bf16.msra.mxu0 %v523_v3  ;;  %v184_v19 = vpack.c.bf16 %v180_v17, %v179_v16 }
  0x1c   : > { %459 = vmatprep.mubr.bf16.mxu1 %v183_v9  ;;  %474 = vmatpush3.bf16.msra.mxu1 %v523_v3 }
  0x1d   : > { %447 = vmatprep.subr.bf16.mxu0 %v524_v10  ;;  %467 = vmatprep.subr.bf16.mxu1 %v524_v10 }
  0x1f   : > { %448 = vmatpush3.bf16.msra.mxu0 %v524_v10 }
  0x20   : > { %475 = vmatpush3.bf16.msra.mxu1 %v524_v10  ;;  %449 = vmatprep.subr.bf16.mxu0 %v525_v11 }
  0x21   : > { %468 = vmatprep.subr.bf16.mxu1 %v525_v11 }
  0x23   : > { %450 = vmatpush3.bf16.msra.mxu0 %v525_v11 }
  0x24   : > { %476 = vmatpush3.bf16.msra.mxu1 %v525_v11  ;;  %451 = vmatprep.subr.bf16.mxu0 %v526_v12 }
  0x25   : > { %469 = vmatprep.subr.bf16.mxu1 %v526_v12 }
  0x27   : > { %452 = vmatpush3.bf16.msra.mxu0 %v526_v12 }
  0x28   : > { %477 = vmatpush3.bf16.msra.mxu1 %v526_v12  ;;  %453 = vmatprep.subr.bf16.mxu0 %v527_v13 }
  0x29   : > { %470 = vmatprep.subr.bf16.mxu1 %v527_v13 }
  0x2b   : > { %454 = vmatpush3.bf16.msra.mxu0 %v527_v13 }
  0x2c   : > { %478 = vmatpush3.bf16.msra.mxu1 %v527_v13 }
  0x2e   : > { %456 = vmatmul.mubr.bf16.vlgmr.msra.gmra.mrb[0].mxu0 %v182_v18 }
  0x2f   : > { %460 = vmatmul.mubr.bf16.vlgmr.msra.gmra.mrb[0].mxu1 %v184_v19 }
 0x101   : > { %v457_v21 = vpop.f32.mrb[0].mxu0 }
 0x102   : > { %v461_v22 = vpop.f32.mrb[0].mxu1  ;;  %v299_v23 = vadd.f32 %v457_v21, %v412_v20  ;;  %v290_v25 = vpop.f32.mrb[1].mxu0 }
 0x103   : > { %v315_v24 = vadd.f32 %v461_v22, %v412_v20  ;;  %v306_v26 = vpop.f32.mrb[1].mxu1  ;;  %v291_v27 = vadd.f32 %v412_v20, %v290_v25  ;;  %v458_v29 = vpop.f32.mrb[2].mxu0 }
 0x104   : > { %v307_v28 = vadd.f32 %v412_v20, %v306_v26  ;;  %v462_v30 = vpop.f32.mrb[2].mxu1  ;;  %323 = vst [vmem:[%s164_s5 + $0x10] sm:$0xff] %v299_v23  ;;  %v302_v31 = vadd.f32 %v458_v29, %v412_v20  ;;  %v293_v33 = vpop.f32.mrb[3].mxu0 }
 0x105   : > { %327 = vst [vmem:[%s164_s5 + $0x30] sm:$0xff] %v315_v24  ;;  %v318_v32 = vadd.f32 %v462_v30, %v412_v20  ;;  %v309_v34 = vpop.f32.mrb[3].mxu1  ;;  %321 = vst [vmem:[%s164_s5] sm:$0xff] %v291_v27  ;;  %v294_v35 = vadd.f32 %v412_v20, %v293_v33 }
 0x106   : > { %325 = vst [vmem:[%s164_s5 + $0x20] sm:$0xff] %v307_v28  ;;  %v310_v36 = vadd.f32 %v412_v20, %v309_v34  ;;  %324 = vst [vmem:[%s164_s5 + $0x18] sm:$0xff] %v302_v31 }
 0x107   : > { %328 = vst [vmem:[%s164_s5 + $0x38] sm:$0xff] %v318_v32  ;;  %322 = vst [vmem:[%s164_s5 + $0x8] sm:$0xff] %v294_v35 }
 0x108   : > { %326 = vst [vmem:[%s164_s5 + $0x28] sm:$0xff] %v310_v36 }
 0x109   : > { %541 = shalt.err (!%p538_p3)
}
 0x10a   : > { %s542_s20 = scalar_lea.hbm %s711_s8, 1024  ;;  %s546_s26 = scalar_lea.hbm %s761_s3, 2048 }
 0x10b   : > { %p543_p4 = scmp.ne.s32.totalorder %s711_s8, %s542_s20  ;;  %p547_p9 = scmp.lt.u32.totalorder %s711_s8, %s761_s3 }
 0x10c   : > { %p548_p10 = scmp.lt.u32.totalorder %s546_s26, %s542_s20  ;;  %p550_p12 = scmp.lt.u32.totalorder %s542_s20, %s711_s8 }
 0x10d   : > { %p544_p7 = pnand %p543_p4, %p653_p5 }
 0x10e   : > { %p549_p11 = por %p548_p10, %p547_p9 }
 0x10f   : > { %p545_p8 = pneg %p544_p7 }
 0x110   : > { %p551_p13 = por %p550_p12, %p549_p11 }
 0x112   : > { %p552_p0 = pnand %p551_p13, %p545_p8 }
 0x114   : > { %555 = shalt.err (!%p552_p0)
}
 0x115   : > { %s593_s29 = smov 128   ;;  %s594_s30 = smov 8  }
 0x116   : > { %479 = dma.vmem_to_hbm [thread:$0]  (%p653_p5), %s713_s6, 1024, %s711_s8, %s717_s9, %s593_s29, %s593_s29, %s594_s30  }
 0x117 PF: > { %p485_p1 = scmp.ge.s32.totalorder %s590_s15, 2  ;;  %s358_s4 = sand.u32 1, %s578_s12  }
 0x118   : > { %s359_s5 = scalar_lea.sflag [#allocation3], %s358_s4 }
 0x119   : > { %p482_p2 = pnand %p485_p1, %p657_p6 }
 0x11b   : > { %573 = dma.done.wait (!%p482_p2), %s359_s5, 1024  }
 0x11c   : > { %575 = vsyncadd (!%p482_p2), %s359_s5, 4294966272  ;;  %p13_p3 = scmp.ge.s32.totalorder %s640_s18, 4   ;;  %s764_s12 = smov %s582_s13 }
 0x11d   : > { %s765_s13 = smov %s586_s14  ;;  %s766_s14 = smov %s651_s21 }
 0x11e   : > { %s767_s15 = smov %s640_s18  ;;  %15 = sbr.rel (!%p13_p3) target bundleno = 3 (0x3), region = 67 }
 0x125   :  { %364 = vsyncpa [#allocation3], 1 }
 0x126   :  { %366 = vsyncpa [#allocation3 + $0x1], 1 }

</bundles_post_ra>
